<compile_context>
chip_gen: v7x
topology: tpu7x:2x2x1
jax: 0.10.0
libtpu: 0.0.40
codegen_flags: <defaults>
</compile_context>

<pallas_src>
import functools

import jax
import jax.numpy as jnp
import numpy as np
from jax.experimental import pallas as pl
from jax.experimental.pallas import tpu as pltpu

LANE = 128


def _round_up(x, m):
    return ((x + m - 1) // m) * m


def _pad2(a, rows, cols):
    r, c = a.shape
    return jnp.pad(a, ((0, rows - r), (0, cols - c)))


def rnd_kernel(x_ref,
               w0, b0, pw1, pb1, pw2, pb2, pw3, pb3, pw4, pb4, tw1, tb1,
               pred_ref, targ_ref, *, split):
    """Fused forward for one batch tile: predictor and target MLPs.

    Layer 0 of both networks is one matmul against the column-concatenated
    weight [pw0 | tw0]; `split` (lane-aligned, =256) is where the predictor
    part of the fused output ends.
    """
    x = x_ref[...].astype(jnp.bfloat16)  # f32 HBM block -> bf16 MXU operand

    def lin(h, w_ref, b_ref):
        # bf16 x bf16 operands, f32 accumulation on the MXU, f32 bias add.
        return jnp.dot(h, w_ref[...], preferred_element_type=jnp.float32) + b_ref[...]

    def relu_bf16(y):
        return jnp.maximum(y, 0.0).astype(jnp.bfloat16)

    # ---- shared layer 0 (single MXU matmul feeds both networks) ----
    y0 = lin(x, w0, b0)
    h = relu_bf16(y0[:, :split])   # predictor hidden (bt, 256)
    t = relu_bf16(y0[:, split:])   # target hidden    (bt, 128-padded)

    # ---- predictor tail (4 matmuls + VPU ReLUs) ----
    h = relu_bf16(lin(h, pw1, pb1))
    h = relu_bf16(lin(h, pw2, pb2))
    h = relu_bf16(lin(h, pw3, pb3))
    pred_ref[...] = lin(h, pw4, pb4).astype(pred_ref.dtype)

    # ---- target tail (1 matmul) ----
    targ_ref[...] = lin(t, tw1, tb1).astype(targ_ref.dtype)


_WEIGHT_KEYS = ("w0", "b0", "pw1", "pb1", "pw2", "pb2",
                "pw3", "pb3", "pw4", "pb4", "tw1", "tb1")


def prepare_params(params):
    """One-time (hoisted) lane-padding + bf16 cast of the weights.

    Zero padding is exact: 0*w = 0 and ReLU(0) = 0, so padded output columns
    are exact zeros and get sliced off in the wrapper. Predictor/target
    layer-0 weights are concatenated along N for the fused first matmul.
    """
    f32, bf16 = jnp.float32, jnp.bfloat16
    obs_dim = params["pw0"].shape[0]
    width = params["pw1"].shape[0]
    target_width = params["tw0"].shape[1]
    out_size = params["pw4"].shape[1]

    width_pad = _round_up(width, LANE)       # 256 (already aligned)
    tgt_pad = _round_up(target_width, LANE)  # 64  -> 128
    out_pad = _round_up(out_size, LANE)      # 32  -> 128

    pw0 = _pad2(params["pw0"], obs_dim, width_pad)
    tw0 = _pad2(params["tw0"], obs_dim, tgt_pad)
    pb0 = _pad2(params["pb0"], 1, width_pad)
    tb0 = _pad2(params["tb0"], 1, tgt_pad)

    return {
        # fused layer 0: [predictor | target]
        "w0": jnp.concatenate([pw0, tw0], axis=1).astype(bf16),
        "b0": jnp.concatenate([pb0, tb0], axis=1).astype(f32),
        # predictor tail
        "pw1": _pad2(params["pw1"], width_pad, width_pad).astype(bf16),
        "pb1": _pad2(params["pb1"], 1, width_pad).astype(f32),
        "pw2": _pad2(params["pw2"], width_pad, out_pad).astype(bf16),
        "pb2": _pad2(params["pb2"], 1, out_pad).astype(f32),
        "pw3": _pad2(params["pw3"], out_pad, out_pad).astype(bf16),
        "pb3": _pad2(params["pb3"], 1, out_pad).astype(f32),
        "pw4": _pad2(params["pw4"], out_pad, out_pad).astype(bf16),
        "pb4": _pad2(params["pb4"], 1, out_pad).astype(f32),
        # target tail
        "tw1": _pad2(params["tw1"], tgt_pad, out_pad).astype(bf16),
        "tb1": _pad2(params["tb1"], 1, out_pad).astype(f32),
    }


def rnd_forward(next_obs, prepared, *, out_size, batch_tile=1024,
                out_dtype=jnp.bfloat16):
    """Tiles over the batch; lane-padded bf16 weights stay resident in VMEM."""
    B, obs_dim = next_obs.shape
    width_pad = prepared["pw1"].shape[0]
    out_pad = prepared["pw4"].shape[1]

    # Batch tile: large enough to amortize ~0.35us/step grid overhead, but
    # split medium batches into >=2 "parallel" steps so 2-TC chips (v7x) use
    # both cores. Tiny batches: one block equal to the full array (always a
    # legal block shape, no partial-block edge case).
    if B >= 2 * LANE:
        bt = min(batch_tile, _round_up(pl.cdiv(B, 2), LANE))
    else:
        bt = B
    grid = pl.cdiv(B, bt)

    weight_args = [prepared[k] for k in _WEIGHT_KEYS]

    # x is fed raw (f32, unpadded) and cast in-kernel; every weight/bias is a
    # full-array block with a constant index_map -> no re-DMA across steps.
    x_spec = pl.BlockSpec((bt, obs_dim), lambda i: (i, 0))
    w_specs = [pl.BlockSpec(w.shape, lambda i: (0, 0)) for w in weight_args]
    out_spec = pl.BlockSpec((bt, out_pad), lambda i: (i, 0))

    matmul_flops = 2 * B * (
        obs_dim * prepared["w0"].shape[1]          # fused layer 0
        + width_pad * width_pad                    # pred layer 1
        + width_pad * out_pad                      # pred layer 2
        + 2 * out_pad * out_pad                    # pred layers 3, 4
        + prepared["tw1"].shape[0] * out_pad       # target layer 1
    )
    bytes_accessed = (
        B * obs_dim * next_obs.dtype.itemsize
        + sum(int(np.prod(w.shape)) * w.dtype.itemsize for w in weight_args)
        + 2 * B * out_pad * jnp.dtype(out_dtype).itemsize
    )

    pred, targ = pl.pallas_call(
        functools.partial(rnd_kernel, split=width_pad),
        out_shape=(
            jax.ShapeDtypeStruct((B, out_pad), out_dtype),
            jax.ShapeDtypeStruct((B, out_pad), out_dtype),
        ),
        grid_spec=pltpu.PrefetchScalarGridSpec(
            num_scalar_prefetch=0,
            grid=(grid,),
            in_specs=[x_spec] + w_specs,
            out_specs=[out_spec, out_spec],
        ),
        compiler_params=pltpu.CompilerParams(
            dimension_semantics=("parallel",),
        ),
        cost_estimate=pl.CostEstimate(
            flops=int(matmul_flops),
            transcendentals=0,
            bytes_accessed=int(bytes_accessed),
        ),
    )(next_obs, *weight_args)

    # Drop the zero-padded output lanes (exact zeros by construction).
    return pred[:, :out_size], targ[:, :out_size]


def _orthogonal(key, in_dim, out_dim, std):
    # torch.nn.init.orthogonal_ on the (out, in) weight, scaled by `std`;
    # stored transposed (in, out) so the kernel computes x @ W.
    init = jax.nn.initializers.orthogonal(scale=std, column_axis=-1)
    w = init(key, (out_dim, in_dim), jnp.float32)
    return jnp.transpose(w)


def make_params(key, obs_dim, output_size, width=256, target_width=64):
    std = float(np.sqrt(2.0))
    ks = jax.random.split(key, 7)
    return {
        # predictor
        "pw0": _orthogonal(ks[0], obs_dim, width, std),
        "pb0": jnp.zeros((1, width), jnp.float32),
        "pw1": _orthogonal(ks[1], width, width, std),
        "pb1": jnp.zeros((1, width), jnp.float32),
        "pw2": _orthogonal(ks[2], width, output_size, std),
        "pb2": jnp.zeros((1, output_size), jnp.float32),
        "pw3": _orthogonal(ks[3], output_size, output_size, std),
        "pb3": jnp.zeros((1, output_size), jnp.float32),
        "pw4": _orthogonal(ks[4], output_size, output_size, 0.01),
        "pb4": jnp.zeros((1, output_size), jnp.float32),
        # target (frozen in torch; irrelevant for forward)
        "tw0": _orthogonal(ks[5], obs_dim, target_width, std),
        "tb0": jnp.zeros((1, target_width), jnp.float32),
        "tw1": _orthogonal(ks[6], target_width, output_size, std),
        "tb1": jnp.zeros((1, output_size), jnp.float32),
    }


def rnd_forward_ref(x, p):
    """Plain-JAX reference with the same bf16-operand / f32-accumulate math.

    Note: bf16 operands diverge from the fp32 torch module; tolerances below
    reflect that (the target/predictor features, not bitwise parity, matter
    for the RND intrinsic reward).
    """
    bf16 = jnp.bfloat16

    def lin(h, w, b):
        return jnp.dot(h.astype(bf16), w.astype(bf16),
                       preferred_element_type=jnp.float32) + b

    h = jax.nn.relu(lin(x, p["pw0"], p["pb0"]))
    h = jax.nn.relu(lin(h, p["pw1"], p["pb1"]))
    h = jax.nn.relu(lin(h, p["pw2"], p["pb2"]))
    h = jax.nn.relu(lin(h, p["pw3"], p["pb3"]))
    pred = lin(h, p["pw4"], p["pb4"])
    t = jax.nn.relu(lin(x, p["tw0"], p["tb0"]))
    targ = lin(t, p["tw1"], p["tb1"])
    return pred, targ


if __name__ == "__main__":
    # Small, module-consistent shapes: obs_shape=(8,4,4) -> obs_dim=128 (flat),
    # output_size=32, batch=16.
    B, obs_dim, output_size = 16, 128, 32

    key = jax.random.PRNGKey(0)
    k_params, k_obs = jax.random.split(key)
    params = make_params(k_params, obs_dim, output_size)
    next_obs = jax.random.normal(k_obs, (B, obs_dim), jnp.float32)

    # One-time weight prep (hoisted out of the per-call path).
    prepared = prepare_params(params)
    jax.block_until_ready(prepared)

    fwd = jax.jit(functools.partial(rnd_forward, out_size=output_size))
    pred, targ = fwd(next_obs, prepared)
    jax.block_until_ready((pred, targ))

    pred_ref, targ_ref = rnd_forward_ref(next_obs, params)
    np.testing.assert_allclose(np.asarray(pred, np.float32),
                               np.asarray(pred_ref), rtol=1e-2, atol=1e-2)
    np.testing.assert_allclose(np.asarray(targ, np.float32),
                               np.asarray(targ_ref), rtol=1e-2, atol=1e-2)

    print("KERNEL_OK")
</pallas_src>

<mosaic_0001>
module attributes {stable_mosaic.version = 11 : i64} {
  func.func @rnd_kernel(%arg0: i32, %arg1: memref<16x128xf32, #tpu.memory_space<vmem>>, %arg2: memref<128x384xbf16, #tpu.memory_space<vmem>>, %arg3: memref<1x384xf32, #tpu.memory_space<vmem>>, %arg4: memref<256x256xbf16, #tpu.memory_space<vmem>>, %arg5: memref<1x256xf32, #tpu.memory_space<vmem>>, %arg6: memref<256x128xbf16, #tpu.memory_space<vmem>>, %arg7: memref<1x128xf32, #tpu.memory_space<vmem>>, %arg8: memref<128x128xbf16, #tpu.memory_space<vmem>>, %arg9: memref<1x128xf32, #tpu.memory_space<vmem>>, %arg10: memref<128x128xbf16, #tpu.memory_space<vmem>>, %arg11: memref<1x128xf32, #tpu.memory_space<vmem>>, %arg12: memref<128x128xbf16, #tpu.memory_space<vmem>>, %arg13: memref<1x128xf32, #tpu.memory_space<vmem>>, %arg14: memref<16x128xbf16, #tpu.memory_space<vmem>>, %arg15: memref<16x128xbf16, #tpu.memory_space<vmem>>) attributes {dimension_semantics = [#tpu.dimension_semantics<parallel>], iteration_bounds = array<i64: 1>, scalar_prefetch = 0 : i64, scratch_operands = 0 : i64, tpu.core_type = #tpu.core_type<tc>, window_params = [{transform_indices = @transform_0, window_bounds = array<i64: 16, 128>}, {pipeline_mode = #tpu.pipeline_mode<synchronous>, transform_indices = @transform_1, window_bounds = array<i64: 128, 384>}, {pipeline_mode = #tpu.pipeline_mode<synchronous>, transform_indices = @transform_2, window_bounds = array<i64: 1, 384>}, {pipeline_mode = #tpu.pipeline_mode<synchronous>, transform_indices = @transform_3, window_bounds = array<i64: 256, 256>}, {pipeline_mode = #tpu.pipeline_mode<synchronous>, transform_indices = @transform_4, window_bounds = array<i64: 1, 256>}, {pipeline_mode = #tpu.pipeline_mode<synchronous>, transform_indices = @transform_5, window_bounds = array<i64: 256, 128>}, {pipeline_mode = #tpu.pipeline_mode<synchronous>, transform_indices = @transform_6, window_bounds = array<i64: 1, 128>}, {pipeline_mode = #tpu.pipeline_mode<synchronous>, transform_indices = @transform_7, window_bounds = array<i64: 128, 128>}, {pipeline_mode = #tpu.pipeline_mode<synchronous>, transform_indices = @transform_8, window_bounds = array<i64: 1, 128>}, {pipeline_mode = #tpu.pipeline_mode<synchronous>, transform_indices = @transform_9, window_bounds = array<i64: 128, 128>}, {pipeline_mode = #tpu.pipeline_mode<synchronous>, transform_indices = @transform_10, window_bounds = array<i64: 1, 128>}, {pipeline_mode = #tpu.pipeline_mode<synchronous>, transform_indices = @transform_11, window_bounds = array<i64: 128, 128>}, {pipeline_mode = #tpu.pipeline_mode<synchronous>, transform_indices = @transform_12, window_bounds = array<i64: 1, 128>}, {transform_indices = @transform_13, window_bounds = array<i64: 16, 128>}, {transform_indices = @transform_14, window_bounds = array<i64: 16, 128>}]} {
    %c0 = arith.constant 0 : index
    %c0_0 = arith.constant 0 : index
    %0 = vector.load %arg1[%c0, %c0_0] : memref<16x128xf32, #tpu.memory_space<vmem>>, vector<16x128xf32>
    %1 = arith.truncf %0 : vector<16x128xf32> to vector<16x128xbf16>
    %c0_1 = arith.constant 0 : index
    %c0_2 = arith.constant 0 : index
    %2 = vector.load %arg2[%c0_1, %c0_2] : memref<128x384xbf16, #tpu.memory_space<vmem>>, vector<128x384xbf16>
    %cst = arith.constant dense<0.000000e+00> : vector<16x384xf32>
    %3 = tpu.matmul %1, %2, %cst {dimension_numbers = #tpu.dot_dimension_numbers<[1], [0], [0], [1], [0, 0, 1, 1], [], []>} : vector<16x128xbf16>, vector<128x384xbf16>, vector<16x384xf32> -> vector<16x384xf32>
    %c0_3 = arith.constant 0 : index
    %c0_4 = arith.constant 0 : index
    %4 = vector.load %arg3[%c0_3, %c0_4] : memref<1x384xf32, #tpu.memory_space<vmem>>, vector<1x384xf32>
    %5 = vector.broadcast %4 : vector<1x384xf32> to vector<16x384xf32>
    %6 = arith.addf %3, %5 : vector<16x384xf32>
    %7 = vector.extract_strided_slice %6 {offsets = [0, 0], sizes = [16, 256], strides = [1, 1]} : vector<16x384xf32> to vector<16x256xf32>
    %cst_5 = arith.constant 0.000000e+00 : f32
    %8 = vector.broadcast %cst_5 : f32 to vector<16x256xf32>
    %9 = arith.maximumf %7, %8 : vector<16x256xf32>
    %10 = arith.truncf %9 : vector<16x256xf32> to vector<16x256xbf16>
    %11 = vector.extract_strided_slice %6 {offsets = [0, 256], sizes = [16, 128], strides = [1, 1]} : vector<16x384xf32> to vector<16x128xf32>
    %cst_6 = arith.constant 0.000000e+00 : f32
    %12 = vector.broadcast %cst_6 : f32 to vector<16x128xf32>
    %13 = arith.maximumf %11, %12 : vector<16x128xf32>
    %14 = arith.truncf %13 : vector<16x128xf32> to vector<16x128xbf16>
    %c0_7 = arith.constant 0 : index
    %c0_8 = arith.constant 0 : index
    %15 = vector.load %arg4[%c0_7, %c0_8] : memref<256x256xbf16, #tpu.memory_space<vmem>>, vector<256x256xbf16>
    %cst_9 = arith.constant dense<0.000000e+00> : vector<16x256xf32>
    %16 = tpu.matmul %10, %15, %cst_9 {dimension_numbers = #tpu.dot_dimension_numbers<[1], [0], [0], [1], [0, 0, 1, 1], [], []>} : vector<16x256xbf16>, vector<256x256xbf16>, vector<16x256xf32> -> vector<16x256xf32>
    %c0_10 = arith.constant 0 : index
    %c0_11 = arith.constant 0 : index
    %17 = vector.load %arg5[%c0_10, %c0_11] : memref<1x256xf32, #tpu.memory_space<vmem>>, vector<1x256xf32>
    %18 = vector.broadcast %17 : vector<1x256xf32> to vector<16x256xf32>
    %19 = arith.addf %16, %18 : vector<16x256xf32>
    %cst_12 = arith.constant 0.000000e+00 : f32
    %20 = vector.broadcast %cst_12 : f32 to vector<16x256xf32>
    %21 = arith.maximumf %19, %20 : vector<16x256xf32>
    %22 = arith.truncf %21 : vector<16x256xf32> to vector<16x256xbf16>
    %c0_13 = arith.constant 0 : index
    %c0_14 = arith.constant 0 : index
    %23 = vector.load %arg6[%c0_13, %c0_14] : memref<256x128xbf16, #tpu.memory_space<vmem>>, vector<256x128xbf16>
    %cst_15 = arith.constant dense<0.000000e+00> : vector<16x128xf32>
    %24 = tpu.matmul %22, %23, %cst_15 {dimension_numbers = #tpu.dot_dimension_numbers<[1], [0], [0], [1], [0, 0, 1, 1], [], []>} : vector<16x256xbf16>, vector<256x128xbf16>, vector<16x128xf32> -> vector<16x128xf32>
    %c0_16 = arith.constant 0 : index
    %c0_17 = arith.constant 0 : index
    %25 = vector.load %arg7[%c0_16, %c0_17] : memref<1x128xf32, #tpu.memory_space<vmem>>, vector<1x128xf32>
    %26 = vector.broadcast %25 : vector<1x128xf32> to vector<16x128xf32>
    %27 = arith.addf %24, %26 : vector<16x128xf32>
    %cst_18 = arith.constant 0.000000e+00 : f32
    %28 = vector.broadcast %cst_18 : f32 to vector<16x128xf32>
    %29 = arith.maximumf %27, %28 : vector<16x128xf32>
    %30 = arith.truncf %29 : vector<16x128xf32> to vector<16x128xbf16>
    %c0_19 = arith.constant 0 : index
    %c0_20 = arith.constant 0 : index
    %31 = vector.load %arg8[%c0_19, %c0_20] : memref<128x128xbf16, #tpu.memory_space<vmem>>, vector<128x128xbf16>
    %cst_21 = arith.constant dense<0.000000e+00> : vector<16x128xf32>
    %32 = tpu.matmul %30, %31, %cst_21 {dimension_numbers = #tpu.dot_dimension_numbers<[1], [0], [0], [1], [0, 0, 1, 1], [], []>} : vector<16x128xbf16>, vector<128x128xbf16>, vector<16x128xf32> -> vector<16x128xf32>
    %c0_22 = arith.constant 0 : index
    %c0_23 = arith.constant 0 : index
    %33 = vector.load %arg9[%c0_22, %c0_23] : memref<1x128xf32, #tpu.memory_space<vmem>>, vector<1x128xf32>
    %34 = vector.broadcast %33 : vector<1x128xf32> to vector<16x128xf32>
    %35 = arith.addf %32, %34 : vector<16x128xf32>
    %cst_24 = arith.constant 0.000000e+00 : f32
    %36 = vector.broadcast %cst_24 : f32 to vector<16x128xf32>
    %37 = arith.maximumf %35, %36 : vector<16x128xf32>
    %38 = arith.truncf %37 : vector<16x128xf32> to vector<16x128xbf16>
    %c0_25 = arith.constant 0 : index
    %c0_26 = arith.constant 0 : index
    %39 = vector.load %arg10[%c0_25, %c0_26] : memref<128x128xbf16, #tpu.memory_space<vmem>>, vector<128x128xbf16>
    %cst_27 = arith.constant dense<0.000000e+00> : vector<16x128xf32>
    %40 = tpu.matmul %38, %39, %cst_27 {dimension_numbers = #tpu.dot_dimension_numbers<[1], [0], [0], [1], [0, 0, 1, 1], [], []>} : vector<16x128xbf16>, vector<128x128xbf16>, vector<16x128xf32> -> vector<16x128xf32>
    %c0_28 = arith.constant 0 : index
    %c0_29 = arith.constant 0 : index
    %41 = vector.load %arg11[%c0_28, %c0_29] : memref<1x128xf32, #tpu.memory_space<vmem>>, vector<1x128xf32>
    %42 = vector.broadcast %41 : vector<1x128xf32> to vector<16x128xf32>
    %43 = arith.addf %40, %42 : vector<16x128xf32>
    %44 = arith.truncf %43 : vector<16x128xf32> to vector<16x128xbf16>
    %c0_30 = arith.constant 0 : index
    %c0_31 = arith.constant 0 : index
    %45 = vector.load %arg14[%c0_30, %c0_31] : memref<16x128xbf16, #tpu.memory_space<vmem>>, vector<16x128xbf16>
    tpu.vector_store %arg14[%c0_30, %c0_31], %44 {strides = array<i32>} : memref<16x128xbf16, #tpu.memory_space<vmem>>, vector<16x128xbf16>,
    %c0_32 = arith.constant 0 : index
    %c0_33 = arith.constant 0 : index
    %46 = vector.load %arg12[%c0_32, %c0_33] : memref<128x128xbf16, #tpu.memory_space<vmem>>, vector<128x128xbf16>
    %cst_34 = arith.constant dense<0.000000e+00> : vector<16x128xf32>
    %47 = tpu.matmul %14, %46, %cst_34 {dimension_numbers = #tpu.dot_dimension_numbers<[1], [0], [0], [1], [0, 0, 1, 1], [], []>} : vector<16x128xbf16>, vector<128x128xbf16>, vector<16x128xf32> -> vector<16x128xf32>
    %c0_35 = arith.constant 0 : index
    %c0_36 = arith.constant 0 : index
    %48 = vector.load %arg13[%c0_35, %c0_36] : memref<1x128xf32, #tpu.memory_space<vmem>>, vector<1x128xf32>
    %49 = vector.broadcast %48 : vector<1x128xf32> to vector<16x128xf32>
    %50 = arith.addf %47, %49 : vector<16x128xf32>
    %51 = arith.truncf %50 : vector<16x128xf32> to vector<16x128xbf16>
    %c0_37 = arith.constant 0 : index
    %c0_38 = arith.constant 0 : index
    %52 = vector.load %arg15[%c0_37, %c0_38] : memref<16x128xbf16, #tpu.memory_space<vmem>>, vector<16x128xbf16>
    tpu.vector_store %arg15[%c0_37, %c0_38], %51 {strides = array<i32>} : memref<16x128xbf16, #tpu.memory_space<vmem>>, vector<16x128xbf16>,
    return
  }
  func.func @transform_0(%arg0: i32) -> (i32, i32) {
    %c0_i32 = arith.constant 0 : i32
    %c0_i32_0 = arith.constant 0 : i32
    return %arg0, %c0_i32 : i32, i32
  }
  func.func @transform_1(%arg0: i32) -> (i32, i32) {
    %c0_i32 = arith.constant 0 : i32
    %c0_i32_0 = arith.constant 0 : i32
    %c0_i32_1 = arith.constant 0 : i32
    return %c0_i32, %c0_i32_0 : i32, i32
  }
  func.func @transform_2(%arg0: i32) -> (i32, i32) {
    %c0_i32 = arith.constant 0 : i32
    %c0_i32_0 = arith.constant 0 : i32
    %c0_i32_1 = arith.constant 0 : i32
    return %c0_i32, %c0_i32_0 : i32, i32
  }
  func.func @transform_3(%arg0: i32) -> (i32, i32) {
    %c0_i32 = arith.constant 0 : i32
    %c0_i32_0 = arith.constant 0 : i32
    %c0_i32_1 = arith.constant 0 : i32
    return %c0_i32, %c0_i32_0 : i32, i32
  }
  func.func @transform_4(%arg0: i32) -> (i32, i32) {
    %c0_i32 = arith.constant 0 : i32
    %c0_i32_0 = arith.constant 0 : i32
    %c0_i32_1 = arith.constant 0 : i32
    return %c0_i32, %c0_i32_0 : i32, i32
  }
  func.func @transform_5(%arg0: i32) -> (i32, i32) {
    %c0_i32 = arith.constant 0 : i32
    %c0_i32_0 = arith.constant 0 : i32
    %c0_i32_1 = arith.constant 0 : i32
    return %c0_i32, %c0_i32_0 : i32, i32
  }
  func.func @transform_6(%arg0: i32) -> (i32, i32) {
    %c0_i32 = arith.constant 0 : i32
    %c0_i32_0 = arith.constant 0 : i32
    %c0_i32_1 = arith.constant 0 : i32
    return %c0_i32, %c0_i32_0 : i32, i32
  }
  func.func @transform_7(%arg0: i32) -> (i32, i32) {
    %c0_i32 = arith.constant 0 : i32
    %c0_i32_0 = arith.constant 0 : i32
    %c0_i32_1 = arith.constant 0 : i32
    return %c0_i32, %c0_i32_0 : i32, i32
  }
  func.func @transform_8(%arg0: i32) -> (i32, i32) {
    %c0_i32 = arith.constant 0 : i32
    %c0_i32_0 = arith.constant 0 : i32
    %c0_i32_1 = arith.constant 0 : i32
    return %c0_i32, %c0_i32_0 : i32, i32
  }
  func.func @transform_9(%arg0: i32) -> (i32, i32) {
    %c0_i32 = arith.constant 0 : i32
    %c0_i32_0 = arith.constant 0 : i32
    %c0_i32_1 = arith.constant 0 : i32
    return %c0_i32, %c0_i32_0 : i32, i32
  }
  func.func @transform_10(%arg0: i32) -> (i32, i32) {
    %c0_i32 = arith.constant 0 : i32
    %c0_i32_0 = arith.constant 0 : i32
    %c0_i32_1 = arith.constant 0 : i32
    return %c0_i32, %c0_i32_0 : i32, i32
  }
  func.func @transform_11(%arg0: i32) -> (i32, i32) {
    %c0_i32 = arith.constant 0 : i32
    %c0_i32_0 = arith.constant 0 : i32
    %c0_i32_1 = arith.constant 0 : i32
    return %c0_i32, %c0_i32_0 : i32, i32
  }
  func.func @transform_12(%arg0: i32) -> (i32, i32) {
    %c0_i32 = arith.constant 0 : i32
    %c0_i32_0 = arith.constant 0 : i32
    %c0_i32_1 = arith.constant 0 : i32
    return %c0_i32, %c0_i32_0 : i32, i32
  }
  func.func @transform_13(%arg0: i32) -> (i32, i32) {
    %c0_i32 = arith.constant 0 : i32
    %c0_i32_0 = arith.constant 0 : i32
    return %arg0, %c0_i32 : i32, i32
  }
  func.func @transform_14(%arg0: i32) -> (i32, i32) {
    %c0_i32 = arith.constant 0 : i32
    %c0_i32_0 = arith.constant 0 : i32
    return %arg0, %c0_i32 : i32, i32
  }
}

</mosaic_0001>

<bundles_post_ra>
// kernel: rnd_forward.1
= control target key start
LH: loop header
LB: loop body
LE: loop exit
PB: predicated region body
PF: predicated region fallthrough
CT: control target
= control target key end

     0   :  { %20 = vsyncpa [#allocation3], 0  ;;  %s2146_s0 = inlined_call_operand.hbm [shape: f32[16,128], index: 0, kind: input, shape index: {}]   ;;  %s2147_s1 = inlined_call_operand.hbm [shape: bf16[128,384], index: 1, kind: input, shape index: {}]   ;;  %s2148_s2 = inlined_call_operand.vmem [shape: f32[1,384], index: 2, kind: input, shape index: {}]   ;;  %s2149_s3 = inlined_call_operand.hbm [shape: bf16[256,256], index: 3, kind: input, shape index: {}]   ;;  %s2150_s4 = inlined_call_operand.vmem [shape: f32[1,256], index: 4, kind: input, shape index: {}]   ;;  %s2151_s5 = inlined_call_operand.hbm [shape: bf16[256,128], index: 5, kind: input, shape index: {}]   ;;  %s2152_s6 = inlined_call_operand.vmem [shape: f32[1,128], index: 6, kind: input, shape index: {}]   ;;  %s2153_s7 = inlined_call_operand.hbm [shape: bf16[128,128], index: 7, kind: input, shape index: {}]   ;;  %s2154_s8 = inlined_call_operand.vmem [shape: f32[1,128], index: 8, kind: input, shape index: {}]   ;;  %s2155_s9 = inlined_call_operand.hbm [shape: bf16[128,128], index: 9, kind: input, shape index: {}]   ;;  %s2156_s10 = inlined_call_operand.vmem [shape: f32[1,128], index: 10, kind: input, shape index: {}]   ;;  %s2157_s11 = inlined_call_operand.hbm [shape: bf16[128,128], index: 11, kind: input, shape index: {}]   ;;  %s2158_s12 = inlined_call_operand.vmem [shape: f32[1,128], index: 12, kind: input, shape index: {}]   ;;  %s2159_s13 = inlined_call_operand.hbm [shape: bf16[16,128], index: 13, kind: output, shape index: {0}]   ;;  %s2160_s14 = inlined_call_operand.hbm [shape: bf16[16,128], index: 14, kind: output, shape index: {1}]  }
   0x1   :  { %21 = vsyncpa [#allocation6], 0 }
   0x2   :  { %22 = vsyncpa [#allocation9], 0 }
   0x3   :  { %23 = vsyncpa [#allocation12], 0 }
   0x4   :  { %24 = vsyncpa [#allocation4], 0 }
   0x5   :  { %25 = vsyncpa [#allocation16], 0  ;;  %s1848_s29 = smov [#allocation5]   ;;  %s1638_s17 = scalar_lea.hbm %s2147_s1, 3072 }
   0x6   :  { %s43_s30 = sshll.u32 %s1848_s29, 4  ;;  %p1639_p0 = scmp.ne.s32.totalorder %s2147_s1, %s1638_s17  ;;  %s44_s30 = int_to_ptr.vmem [resolvable:$true] %s43_s30 }
   0x7   :  { %p1642_p1 = scmp.lt.u32.totalorder %s1638_s17, %s2147_s1 }
   0x9   :  { %p1644_p2 = pnand %p1642_p1, %p1639_p0 }
   0xb   :  { %1647 = shalt.err (!%p1644_p2)
}
   0xc   :  { %s1648_s22 = scalar_lea.vmem %s44_s30, 3072  ;;  %p1653_p4 = scmp.lt.s32.totalorder %s44_s30, %s44_s30 }
   0xd   :  { %p1649_p3 = scmp.ne.s32.totalorder %s44_s30, %s1648_s22  ;;  %p1654_p5 = scmp.lt.s32.totalorder %s1648_s22, %s1648_s22 }
   0xf   :  { %p1655_p6 = por %p1654_p5, %p1653_p4 }
  0x11   :  { %p1656_p7 = pnand %p1655_p6, %p1649_p3 }
  0x13   :  { %1659 = shalt.err (!%p1656_p7)
}
  0x14   :  { %s1849_s23 = smov 192   ;;  %s1850_s24 = smov 12  }
  0x15   :  { %49 = dma.hbm_to_vmem [thread:$0]  %s2147_s1, 3072, %s44_s30, [#allocation6], %s1849_s23, %s1849_s23, %s1850_s24  }
  0x16   :  { %s1851_s27 = smov [#allocation8]   ;;  %s1660_s16 = scalar_lea.hbm %s2151_s5, 2048 }
  0x17   :  { %s71_s28 = sshll.u32 %s1851_s27, 4  ;;  %p1661_p8 = scmp.ne.s32.totalorder %s2151_s5, %s1660_s16  ;;  %s72_s28 = int_to_ptr.vmem [resolvable:$true] %s71_s28 }
  0x18   :  { %p1664_p9 = scmp.lt.u32.totalorder %s1660_s16, %s2151_s5 }
  0x1a   :  { %p1666_p10 = pnand %p1664_p9, %p1661_p8 }
  0x1c   :  { %1669 = shalt.err (!%p1666_p10)
}
  0x1d   :  { %s1670_s21 = scalar_lea.vmem %s72_s28, 2048  ;;  %p1675_p12 = scmp.lt.s32.totalorder %s72_s28, %s72_s28 }
  0x1e   :  { %p1671_p11 = scmp.ne.s32.totalorder %s72_s28, %s1670_s21  ;;  %p1676_p13 = scmp.lt.s32.totalorder %s1670_s21, %s1670_s21 }
  0x20   :  { %p1677_p0 = por %p1676_p13, %p1675_p12 }
  0x22   :  { %p1678_p1 = pnand %p1677_p0, %p1671_p11 }
  0x24   :  { %1681 = shalt.err (!%p1678_p1)
}
  0x25   :  { %s1852_s1 = smov 64   ;;  %s1853_s30 = smov 4  }
  0x26   :  { %77 = dma.hbm_to_vmem [thread:$0]  %s2151_s5, 2048, %s72_s28, [#allocation9], %s1852_s1, %s1852_s1, %s1853_s30  }
  0x27   :  { %s1854_s24 = smov [#allocation11]   ;;  %s1855_s26 = smov [#allocation2]  }
  0x28   :  { %s99_s25 = sshll.u32 %s1854_s24, 4  ;;  %s31_s27 = sshll.u32 %s1855_s26, 4  ;;  %s100_s25 = int_to_ptr.vmem [resolvable:$true] %s99_s25  ;;  %s1968_s27 = int_to_ptr.vmem [resolvable:$true] %s31_s27 }
  0x29   :  { %s1682_s16 = scalar_lea.hbm %s2155_s9, 1024 }
  0x2a   :  { %p1683_p2 = scmp.ne.s32.totalorder %s2155_s9, %s1682_s16  ;;  %p1686_p3 = scmp.lt.u32.totalorder %s1682_s16, %s2155_s9 }
  0x2c   :  { %p1688_p4 = pnand %p1686_p3, %p1683_p2 }
  0x2e   :  { %1691 = shalt.err (!%p1688_p4)
}
  0x2f   :  { %s1692_s5 = scalar_lea.vmem %s100_s25, 1024  ;;  %p1697_p6 = scmp.lt.s32.totalorder %s100_s25, %s100_s25 }
  0x30   :  { %p1693_p5 = scmp.ne.s32.totalorder %s100_s25, %s1692_s5  ;;  %p1698_p7 = scmp.lt.s32.totalorder %s1692_s5, %s1692_s5 }
  0x32   :  { %p1699_p8 = por %p1698_p7, %p1697_p6 }
  0x34   :  { %p1700_p9 = pnand %p1699_p8, %p1693_p5 }
  0x36   :  { %1703 = shalt.err (!%p1700_p9)
}
  0x37   :  { %105 = dma.hbm_to_vmem [thread:$0]  %s2155_s9, 1024, %s100_s25, [#allocation12], %s1852_s1, %s1852_s1, %s1853_s30  }
  0x38   :  { %s1704_s24 = scalar_lea.hbm %s2146_s0, 256 }
  0x39   :  { %p1705_p10 = scmp.ne.s32.totalorder %s2146_s0, %s1704_s24  ;;  %p1708_p11 = scmp.lt.u32.totalorder %s1704_s24, %s2146_s0 }
  0x3b   :  { %p1710_p12 = pnand %p1708_p11, %p1705_p10 }
  0x3d   :  { %1713 = shalt.err (!%p1710_p12)
}
  0x3e   :  { %s1714_s17 = scalar_lea.vmem %s1968_s27, 256  ;;  %p1719_p0 = scmp.lt.s32.totalorder %s1968_s27, %s1968_s27 }
  0x3f   :  { %p1715_p13 = scmp.ne.s32.totalorder %s1968_s27, %s1714_s17  ;;  %p1720_p1 = scmp.lt.s32.totalorder %s1714_s17, %s1714_s17 }
  0x41   :  { %p1721_p2 = por %p1720_p1, %p1719_p0 }
  0x43   :  { %p1722_p3 = pnand %p1721_p2, %p1715_p13 }
  0x45   :  { %1725 = shalt.err (!%p1722_p3)
}
  0x46   :  { %s1856_s9 = smov 128   ;;  %s1857_s25 = smov 8  }
  0x47   :  { %37 = dma.hbm_to_vmem [thread:$0]  %s2146_s0, 256, %s1968_s27, [#allocation3], %s1856_s9, %s1856_s9, %s1857_s25  }
  0x48   :  { %s1858_s20 = smov [#allocation7]   ;;  %s1859_s28 = smov [#allocation10]  }
  0x49   :  { %s57_s5 = sshll.u32 %s1858_s20, 4  ;;  %s85_s21 = sshll.u32 %s1859_s28, 4  ;;  %s58_s5 = int_to_ptr.vmem [resolvable:$true] %s57_s5  ;;  %s2002_s21 = int_to_ptr.vmem [resolvable:$true] %s85_s21 }
  0x4a   :  { %s1726_s24 = scalar_lea.hbm %s2149_s3, 4096 }
  0x4b   :  { %p1727_p4 = scmp.ne.s32.totalorder %s2149_s3, %s1726_s24  ;;  %p1730_p5 = scmp.lt.u32.totalorder %s1726_s24, %s2149_s3 }
  0x4d   :  { %p1732_p6 = pnand %p1730_p5, %p1727_p4 }
  0x4f   :  { %1735 = shalt.err (!%p1732_p6)
}
  0x50   :  { %s1736_s0 = scalar_lea.vmem %s58_s5, 4096  ;;  %p1741_p8 = scmp.lt.s32.totalorder %s58_s5, %s58_s5 }
  0x51   :  { %p1737_p7 = scmp.ne.s32.totalorder %s58_s5, %s1736_s0  ;;  %p1742_p9 = scmp.lt.s32.totalorder %s1736_s0, %s1736_s0 }
  0x53   :  { %p1743_p10 = por %p1742_p9, %p1741_p8 }
  0x55   :  { %p1744_p11 = pnand %p1743_p10, %p1737_p7 }
  0x57   :  { %1747 = shalt.err (!%p1744_p11)
}
  0x58   :  { %63 = dma.hbm_to_vmem [thread:$0]  %s2149_s3, 4096, %s58_s5, [#allocation6], %s1856_s9, %s1856_s9, %s1857_s25  }
  0x59   :  { %s1748_s20 = scalar_lea.hbm %s2153_s7, 1024 }
  0x5a   :  { %p1749_p12 = scmp.ne.s32.totalorder %s2153_s7, %s1748_s20  ;;  %p1752_p13 = scmp.lt.u32.totalorder %s1748_s20, %s2153_s7 }
  0x5c   :  { %p1754_p0 = pnand %p1752_p13, %p1749_p12 }
  0x5e   :  { %1757 = shalt.err (!%p1754_p0)
}
  0x5f   :  { %s1758_s26 = scalar_lea.vmem %s2002_s21, 1024  ;;  %p1763_p2 = scmp.lt.s32.totalorder %s2002_s21, %s2002_s21 }
  0x60   :  { %p1759_p1 = scmp.ne.s32.totalorder %s2002_s21, %s1758_s26  ;;  %p1764_p3 = scmp.lt.s32.totalorder %s1758_s26, %s1758_s26 }
  0x62   :  { %p1765_p4 = por %p1764_p3, %p1763_p2 }
  0x64   :  { %p1766_p5 = pnand %p1765_p4, %p1759_p1 }
  0x66   :  { %1769 = shalt.err (!%p1766_p5)
}
  0x67   :  { %91 = dma.hbm_to_vmem [thread:$0]  %s2153_s7, 1024, %s2002_s21, [#allocation9], %s1852_s1, %s1852_s1, %s1853_s30  }
  0x68   :  { %s1860_s25 = smov [#allocation13]   ;;  %s1770_s16 = scalar_lea.hbm %s2157_s11, 1024 }
  0x69   :  { %s113_s5 = sshll.u32 %s1860_s25, 4  ;;  %p1771_p6 = scmp.ne.s32.totalorder %s2157_s11, %s1770_s16  ;;  %s114_s5 = int_to_ptr.vmem [resolvable:$true] %s113_s5 }
  0x6a   :  { %p1774_p7 = scmp.lt.u32.totalorder %s1770_s16, %s2157_s11 }
  0x6c   :  { %p1776_p8 = pnand %p1774_p7, %p1771_p6 }
  0x6e   :  { %1779 = shalt.err (!%p1776_p8)
}
  0x6f   :  { %s1780_s19 = scalar_lea.vmem %s114_s5, 1024  ;;  %p1785_p10 = scmp.lt.s32.totalorder %s114_s5, %s114_s5 }
  0x70   :  { %p1781_p9 = scmp.ne.s32.totalorder %s114_s5, %s1780_s19  ;;  %p1786_p11 = scmp.lt.s32.totalorder %s1780_s19, %s1780_s19 }
  0x72   :  { %p1787_p12 = por %p1786_p11, %p1785_p10 }
  0x74   :  { %p1788_p13 = pnand %p1787_p12, %p1781_p9 }
  0x76   :  { %1791 = shalt.err (!%p1788_p13)
}
  0x77   :  { %119 = dma.hbm_to_vmem [thread:$0]  %s2157_s11, 1024, %s114_s5, [#allocation12], %s1852_s1, %s1852_s1, %s1853_s30  }
  0x78   :  { %1836 = dma.done.wait [#allocation3], 256  }
  0x79   :  { %1837 = vsyncadd [#allocation3], 4294967040 }
  0x7a   :  { %1838 = dma.done.wait [#allocation6], 7168  }
  0x7b   :  { %1839 = vsyncadd [#allocation6], 4294960128 }
  0x7c   :  { %1840 = dma.done.wait [#allocation9], 3072  }
  0x7d   :  { %1841 = vsyncadd [#allocation9], 4294964224 }
  0x7e   :  { %1842 = dma.done.wait [#allocation12], 2048  }
  0x7f   :  { %1843 = vsyncadd [#allocation12], 4294965248  ;;  %v1861_v0 = vmov 0   ;;  %v1518_v1 = vld [vmem:[#allocation5 + $0x4] ss:$12 sps:$4 sm:$0xff]   ;;  %v145_v18 = vld [vmem:[#allocation2 + $0x8] sm:$0xff] }
  0x80   :  { %356 = vmatprep.mubr.bf16.mxu0 %v1861_v0  ;;  %v1520_v2 = vld [vmem:[#allocation5] ss:$12 sps:$4 sm:$0xff]   ;;  %324 = vmatprep.subr.bf16.mxu0 %v1518_v1  ;;  %v1521_v3 = vld [vmem:[#allocation5 + $0x1c] ss:$12 sps:$4 sm:$0xff]   ;;  %v1523_v4 = vld [vmem:[#allocation5 + $0x18] ss:$12 sps:$4 sm:$0xff]  }
  0x81   :  { %325 = vmatpush1.bf16.msra.mxu0 %v1520_v2  ;;  %v1524_v5 = vld [vmem:[#allocation5 + $0x34] ss:$12 sps:$4 sm:$0xff]   ;;  %v1526_v6 = vld [vmem:[#allocation5 + $0x30] ss:$12 sps:$4 sm:$0xff]   ;;  %v1527_v7 = vld [vmem:[#allocation5 + $0x4c] ss:$12 sps:$4 sm:$0xff]  }
  0x82   :  { %326 = vmatprep.subr.bf16.mxu0 %v1521_v3  ;;  %v1529_v8 = vld [vmem:[#allocation5 + $0x48] ss:$12 sps:$4 sm:$0xff]   ;;  %v1530_v9 = vld [vmem:[#allocation5 + $0x64] ss:$12 sps:$4 sm:$0xff]   ;;  %v1532_v10 = vld [vmem:[#allocation5 + $0x60] ss:$12 sps:$4 sm:$0xff]  }
  0x83   :  { %v1533_v11 = vld [vmem:[#allocation5 + $0x7c] ss:$12 sps:$4 sm:$0xff]   ;;  %v1535_v12 = vld [vmem:[#allocation5 + $0x78] ss:$12 sps:$4 sm:$0xff]   ;;  %v1536_v13 = vld [vmem:[#allocation5 + $0x94] ss:$12 sps:$4 sm:$0xff]  }
  0x84   :  { %v1538_v14 = vld [vmem:[#allocation5 + $0x90] ss:$12 sps:$4 sm:$0xff]   ;;  %v1539_v15 = vld [vmem:[#allocation5 + $0xac] ss:$12 sps:$4 sm:$0xff]   ;;  %v1541_v16 = vld [vmem:[#allocation5 + $0xa8] ss:$12 sps:$4 sm:$0xff]  }
  0x85   :  { %327 = vmatpush1.bf16.msra.mxu0 %v1523_v4  ;;  %v144_v17 = vld [vmem:[#allocation2] sm:$0xff]  ;;  %v1544_v19 = vld [vmem:[#allocation7 + $0x4] ss:$8 sps:$4 sm:$0xff]   ;;  %v1542_v20 = vld [vmem:[#allocation7] ss:$8 sps:$4 sm:$0xff]   ;;  %v1862_v53 = vmov 0.0  }
  0x86   :  { %328 = vmatprep.subr.bf16.mxu0 %v1524_v5  ;;  %v2051_v21 = vpack.c.bf16 %v145_v18, %v144_v17  ;;  %v1547_v22 = vld [vmem:[#allocation7 + $0x14] ss:$8 sps:$4 sm:$0xff]   ;;  %v1545_v23 = vld [vmem:[#allocation7 + $0x10] ss:$8 sps:$4 sm:$0xff]   ;;  %v1550_v24 = vld [vmem:[#allocation7 + $0x24] ss:$8 sps:$4 sm:$0xff]   ;;  %1420 = vmatprep.subr.bf16.mxu1 %v1862_v53 }
  0x87   :  { %v1548_v25 = vld [vmem:[#allocation7 + $0x20] ss:$8 sps:$4 sm:$0xff]   ;;  %v1553_v26 = vld [vmem:[#allocation7 + $0x34] ss:$8 sps:$4 sm:$0xff]   ;;  %v1551_v27 = vld [vmem:[#allocation7 + $0x30] ss:$8 sps:$4 sm:$0xff]  }
  0x88   :  { %v1556_v28 = vld [vmem:[#allocation7 + $0x44] ss:$8 sps:$4 sm:$0xff]   ;;  %v1554_v29 = vld [vmem:[#allocation7 + $0x40] ss:$8 sps:$4 sm:$0xff]   ;;  %v1559_v30 = vld [vmem:[#allocation7 + $0x54] ss:$8 sps:$4 sm:$0xff]  }
  0x89   :  { %329 = vmatpush1.bf16.msra.mxu0 %v1526_v6  ;;  %v1557_v31 = vld [vmem:[#allocation7 + $0x50] ss:$8 sps:$4 sm:$0xff]   ;;  %v1562_v32 = vld [vmem:[#allocation7 + $0x64] ss:$8 sps:$4 sm:$0xff]   ;;  %v1560_v33 = vld [vmem:[#allocation7 + $0x60] ss:$8 sps:$4 sm:$0xff]  }
  0x8a   :  { %330 = vmatprep.subr.bf16.mxu0 %v1527_v7  ;;  %v1565_v34 = vld [vmem:[#allocation7 + $0x74] ss:$8 sps:$4 sm:$0xff]   ;;  %v1563_v35 = vld [vmem:[#allocation7 + $0x70] ss:$8 sps:$4 sm:$0xff]   ;;  %v1568_v36 = vld [vmem:[#allocation7 + $0x84] ss:$8 sps:$4 sm:$0xff]  }
  0x8b   :  { %v1566_v37 = vld [vmem:[#allocation7 + $0x80] ss:$8 sps:$4 sm:$0xff]   ;;  %v1571_v38 = vld [vmem:[#allocation7 + $0x94] ss:$8 sps:$4 sm:$0xff]   ;;  %v1569_v39 = vld [vmem:[#allocation7 + $0x90] ss:$8 sps:$4 sm:$0xff]  }
  0x8c   :  { %v1574_v40 = vld [vmem:[#allocation7 + $0xa4] ss:$8 sps:$4 sm:$0xff]   ;;  %v1572_v41 = vld [vmem:[#allocation7 + $0xa0] ss:$8 sps:$4 sm:$0xff]   ;;  %v1577_v42 = vld [vmem:[#allocation7 + $0xb4] ss:$8 sps:$4 sm:$0xff]  }
  0x8d   :  { %331 = vmatpush1.bf16.msra.mxu0 %v1529_v8  ;;  %v1575_v43 = vld [vmem:[#allocation7 + $0xb0] ss:$8 sps:$4 sm:$0xff]   ;;  %v1580_v44 = vld [vmem:[#allocation7 + $0xc4] ss:$8 sps:$4 sm:$0xff]   ;;  %v1578_v45 = vld [vmem:[#allocation7 + $0xc0] ss:$8 sps:$4 sm:$0xff]   ;;  %v181_v8 = vlaneseq }
  0x8e   :  { %332 = vmatprep.subr.bf16.mxu0 %v1530_v9  ;;  %v1583_v46 = vld [vmem:[#allocation7 + $0xd4] ss:$8 sps:$4 sm:$0xff]   ;;  %v1581_v47 = vld [vmem:[#allocation7 + $0xd0] ss:$8 sps:$4 sm:$0xff]   ;;  %v1586_v48 = vld [vmem:[#allocation7 + $0xe4] ss:$8 sps:$4 sm:$0xff]  }
  0x8f   :  { %v1584_v49 = vld [vmem:[#allocation7 + $0xe0] ss:$8 sps:$4 sm:$0xff]   ;;  %v1589_v50 = vld [vmem:[#allocation7 + $0xf4] ss:$8 sps:$4 sm:$0xff]   ;;  %v1587_v51 = vld [vmem:[#allocation7 + $0xf0] ss:$8 sps:$4 sm:$0xff]  }
  0x90   :  { %v1590_v52 = vld [vmem:[#allocation5 + $0x8] ss:$12 sps:$4 sm:$0xff]   ;;  %vm1863_vm0 = vmmov 0   ;;  %v1591_v54 = vld [vmem:[#allocation5 + $0x20] ss:$12 sps:$4 sm:$0xff]   ;;  %v1604_v3 = vld [vmem:[#allocation8 + $0x58] sm:$0xff]  }
  0x91   :  { %333 = vmatpush1.bf16.msra.mxu0 %v1532_v10  ;;  %1436 = vmatprep.mubr.msk.bf16.mxu1 %vm1863_vm0, %v1862_v53  ;;  %v1592_v55 = vld [vmem:[#allocation5 + $0x38] ss:$12 sps:$4 sm:$0xff]   ;;  %v1593_v56 = vld [vmem:[#allocation5 + $0x50] ss:$12 sps:$4 sm:$0xff]   ;;  %v1594_v57 = vld [vmem:[#allocation5 + $0x68] ss:$12 sps:$4 sm:$0xff]  }
  0x92   :  { %334 = vmatprep.subr.bf16.mxu0 %v1533_v11  ;;  %1421 = vmatpush3.bf16.msra.mxu1 %v1590_v52  ;;  %v1595_v58 = vld [vmem:[#allocation5 + $0x80] ss:$12 sps:$4 sm:$0xff]   ;;  %v1596_v59 = vld [vmem:[#allocation5 + $0x98] ss:$12 sps:$4 sm:$0xff]   ;;  %v1597_v60 = vld [vmem:[#allocation5 + $0xb0] ss:$12 sps:$4 sm:$0xff]  }
  0x93   :  { %1422 = vmatprep.subr.bf16.mxu1 %v1862_v53  ;;  %v1598_v61 = vld [vmem:[#allocation8 + $0x40] sm:$0xff]   ;;  %v1600_v63 = vld [vmem:[#allocation8 + $0x48] sm:$0xff]   ;;  %v1602_v1 = vld [vmem:[#allocation8 + $0x50] sm:$0xff]   ;;  %v182_v9 = vshrl.u32 %v181_v8, 7 }
  0x94   :  { %v1599_v62 = vld [vmem:[#allocation8] sm:$0xff]   ;;  %v1601_v0 = vld [vmem:[#allocation8 + $0x8] sm:$0xff]   ;;  %v1603_v2 = vld [vmem:[#allocation8 + $0x10] sm:$0xff]  }
  0x95   :  { %335 = vmatpush1.bf16.msra.mxu0 %v1535_v12  ;;  %v1605_v4 = vld [vmem:[#allocation8 + $0x18] sm:$0xff]   ;;  %v1606_v5 = vld [vmem:[#allocation8 + $0x60] sm:$0xff]   ;;  %v1608_v7 = vld [vmem:[#allocation8 + $0x68] sm:$0xff]   ;;  %v183_v10 = vsub.s32 0, %v182_v9  ;;  %v187_v12 = vsub.s32 1, %v182_v9 }
  0x96   :  { %336 = vmatprep.subr.bf16.mxu0 %v1536_v13  ;;  %1423 = vmatpush3.bf16.msra.mxu1 %v1591_v54  ;;  %v1607_v6 = vld [vmem:[#allocation8 + $0x20] sm:$0xff]   ;;  %v179_v11 = vld [vmem:[%s2148_s2] sm:$0x7]  ;;  %v1631_v8 = vld [vmem:[#allocation11 + $0x8] sm:$0xff]  }
  0x97   :  { %1424 = vmatprep.subr.bf16.mxu1 %v1862_v53  ;;  %v184_v13 = vrot.slane %v179_v11, %v183_v10 }
  0x99   :  { %337 = vmatpush1.bf16.msra.mxu0 %v1538_v14  ;;  %v188_v14 = vrot.slane %v179_v11, %v187_v12 }
  0x9a   :  { %338 = vmatprep.subr.bf16.mxu0 %v1539_v15  ;;  %1425 = vmatpush3.bf16.msra.mxu1 %v1592_v55 }
  0x9b   :  { %1426 = vmatprep.subr.bf16.mxu1 %v1862_v53 }
  0x9d   :  { %339 = vmatpush1.bf16.msra.mxu0 %v1541_v16 }
  0x9e   :  { %621 = vmatprep.subr.bf16.mxu0 %v1544_v19  ;;  %1427 = vmatpush3.bf16.msra.mxu1 %v1593_v56 }
  0x9f   :  { %1428 = vmatprep.subr.bf16.mxu1 %v1862_v53 }
  0xa0   :  { %357 = vmatmul.mubr.bf16.vlgmr.msra.gmra.mrb[0].mxu0 %v2051_v21 }
  0xa1   :  { %622 = vmatpush1.bf16.msra.mxu0 %v1542_v20 }
  0xa2   :  { %623 = vmatprep.subr.bf16.mxu0 %v1547_v22  ;;  %1429 = vmatpush3.bf16.msra.mxu1 %v1594_v57 }
  0xa3   :  { %1430 = vmatprep.subr.bf16.mxu1 %v1862_v53 }
  0xa5   :  { %624 = vmatpush1.bf16.msra.mxu0 %v1545_v23 }
  0xa6   :  { %625 = vmatprep.subr.bf16.mxu0 %v1550_v24  ;;  %1431 = vmatpush3.bf16.msra.mxu1 %v1595_v58 }
  0xa7   :  { %1432 = vmatprep.subr.bf16.mxu1 %v1862_v53 }
  0xa9   :  { %626 = vmatpush1.bf16.msra.mxu0 %v1548_v25 }
  0xaa   :  { %627 = vmatprep.subr.bf16.mxu0 %v1553_v26  ;;  %1433 = vmatpush3.bf16.msra.mxu1 %v1596_v59 }
  0xab   :  { %1434 = vmatprep.subr.bf16.mxu1 %v1862_v53 }
  0xad   :  { %628 = vmatpush1.bf16.msra.mxu0 %v1551_v27 }
  0xae   :  { %629 = vmatprep.subr.bf16.mxu0 %v1556_v28  ;;  %1435 = vmatpush3.bf16.msra.mxu1 %v1597_v60 }
  0xaf   :  { %1371 = vmatprep.subr.bf16.mxu1 %v1598_v61 }
  0xb1   :  { %630 = vmatpush1.bf16.msra.mxu0 %v1554_v29  ;;  %1437 = vmatmul.mubr.bf16.vlgmr.msra.gmra.mrb[0].mxu1 %v2051_v21  ;;  %v1609_v29 = vld [vmem:[#allocation8 + $0x28] sm:$0xff]  }
  0xb2   :  { %631 = vmatprep.subr.bf16.mxu0 %v1559_v30  ;;  %1372 = vmatpush3.bf16.msra.mxu1 %v1599_v62  ;;  %v1610_v30 = vld [vmem:[#allocation8 + $0x70] sm:$0xff]  }
  0xb3   :  { %1373 = vmatprep.subr.bf16.mxu1 %v1600_v63  ;;  %v1614_v63 = vld [vmem:[#allocation10] sm:$0xff]  }
  0xb5   :  { %632 = vmatpush1.bf16.msra.mxu0 %v1557_v31  ;;  %v1611_v31 = vld [vmem:[#allocation8 + $0x30] sm:$0xff]  }
  0xb6   :  { %633 = vmatprep.subr.bf16.mxu0 %v1562_v32  ;;  %1374 = vmatpush3.bf16.msra.mxu1 %v1601_v0  ;;  %v1612_v32 = vld [vmem:[#allocation8 + $0x78] sm:$0xff]   ;;  %v1615_v0 = vld [vmem:[#allocation10 + $0x8] sm:$0xff]  }
  0xb7   :  { %1375 = vmatprep.subr.bf16.mxu1 %v1602_v1  ;;  %v1616_v1 = vld [vmem:[#allocation10 + $0x10] sm:$0xff]  }
  0xb9   :  { %634 = vmatpush1.bf16.msra.mxu0 %v1560_v33  ;;  %v1613_v33 = vld [vmem:[#allocation8 + $0x38] sm:$0xff]  }
  0xba   :  { %635 = vmatprep.subr.bf16.mxu0 %v1565_v34  ;;  %1376 = vmatpush3.bf16.msra.mxu1 %v1603_v2  ;;  %v191_v34 = vsub.s32 2, %v182_v9  ;;  %v1617_v2 = vld [vmem:[#allocation10 + $0x18] sm:$0xff]   ;;  %v1632_v9 = vld [vmem:[#allocation11 + $0x10] sm:$0xff]  }
  0xbb   :  { %1377 = vmatprep.subr.bf16.mxu1 %v1604_v3  ;;  %v1618_v3 = vld [vmem:[#allocation10 + $0x20] sm:$0xff]  }
  0xbd   :  { %636 = vmatpush1.bf16.msra.mxu0 %v1563_v35  ;;  %v192_v35 = vrot.slane %v179_v11, %v191_v34  ;;  %v1634_v11 = vld [vmem:[#allocation11 + $0x20] sm:$0xff]   ;;  %v1637_v34 = vld [vmem:[#allocation11 + $0x38] sm:$0xff]  }
  0xbe   :  { %637 = vmatprep.subr.bf16.mxu0 %v1568_v36  ;;  %1378 = vmatpush3.bf16.msra.mxu1 %v1605_v4  ;;  %v1619_v4 = vld [vmem:[#allocation10 + $0x28] sm:$0xff]  }
  0xbf   :  { %1379 = vmatprep.subr.bf16.mxu1 %v1606_v5  ;;  %v1620_v5 = vld [vmem:[#allocation10 + $0x30] sm:$0xff]  }
  0xc1   :  { %638 = vmatpush1.bf16.msra.mxu0 %v1566_v37 }
  0xc2   :  { %639 = vmatprep.subr.bf16.mxu0 %v1571_v38  ;;  %1380 = vmatpush3.bf16.msra.mxu1 %v1607_v6  ;;  %v1621_v6 = vld [vmem:[#allocation10 + $0x38] sm:$0xff]  }
  0xc3   :  { %1381 = vmatprep.subr.bf16.mxu1 %v1608_v7  ;;  %v1630_v7 = vld [vmem:[#allocation11] sm:$0xff]  }
  0xc5   :  { %640 = vmatpush1.bf16.msra.mxu0 %v1569_v39 }
  0xc6   :  { %641 = vmatprep.subr.bf16.mxu0 %v1574_v40  ;;  %1382 = vmatpush3.bf16.msra.mxu1 %v1609_v29  ;;  %v1626_v29 = vld [vmem:[#allocation13 + $0x20] sm:$0xff]  }
  0xc7   :  { %1383 = vmatprep.subr.bf16.mxu1 %v1610_v30  ;;  %v1627_v30 = vld [vmem:[#allocation13 + $0x28] sm:$0xff]  }
  0xc9   :  { %642 = vmatpush1.bf16.msra.mxu0 %v1572_v41 }
  0xca   :  { %643 = vmatprep.subr.bf16.mxu0 %v1577_v42  ;;  %1384 = vmatpush3.bf16.msra.mxu1 %v1611_v31  ;;  %v1628_v31 = vld [vmem:[#allocation13 + $0x30] sm:$0xff]  }
  0xcb   :  { %1385 = vmatprep.subr.bf16.mxu1 %v1612_v32  ;;  %v1629_v32 = vld [vmem:[#allocation13 + $0x38] sm:$0xff]  }
  0xcd   :  { %644 = vmatpush1.bf16.msra.mxu0 %v1575_v43 }
  0xce   :  { %645 = vmatprep.subr.bf16.mxu0 %v1580_v44  ;;  %1386 = vmatpush3.bf16.msra.mxu1 %v1613_v33  ;;  %v1636_v33 = vld [vmem:[#allocation11 + $0x30] sm:$0xff]  }
  0xcf   :  { %1440 = vmatprep.subr.bf16.mxu1 %v1862_v53 }
  0xd1   :  { %646 = vmatpush1.bf16.msra.mxu0 %v1578_v45  ;;  %v449_v45 = vld [vmem:[%s2150_s4] sm:$0x3] }
  0xd2   :  { %647 = vmatprep.subr.bf16.mxu0 %v1583_v46  ;;  %v454_v46 = vrot.slane %v449_v45, %v183_v10  ;;  %v1633_v10 = vld [vmem:[#allocation11 + $0x18] sm:$0xff]  }
  0xd5   :  { %648 = vmatpush1.bf16.msra.mxu0 %v1581_v47  ;;  %v458_v47 = vrot.slane %v449_v45, %v187_v12  ;;  %v1635_v12 = vld [vmem:[#allocation11 + $0x28] sm:$0xff]  }
  0xd6   :  { %649 = vmatprep.subr.bf16.mxu0 %v1586_v48 }
  0xd9   :  { %650 = vmatpush1.bf16.msra.mxu0 %v1584_v49 }
  0xda   :  { %651 = vmatprep.subr.bf16.mxu0 %v1589_v50 }
  0xdd   :  { %652 = vmatpush1.bf16.msra.mxu0 %v1587_v51 }
  0xde   :  { %1460 = vmatprep.subr.bf16.mxu0 %v1862_v53 }
 0x173   :  { %v358_v15 = vpop.f32.mrb[0].mxu0 }
 0x174   :  { %v359_v16 = vadd.f32 %v358_v15, %v184_v13  ;;  %v360_v17 = vpop.f32.mrb[1].mxu0 }
 0x175   :  { %v361_v18 = vadd.f32 %v360_v17, %v188_v14  ;;  %v362_v19 = vpop.f32.mrb[2].mxu0 }
 0x176   :  { %v363_v20 = vadd.f32 %v362_v19, %v184_v13  ;;  %v364_v21 = vpop.f32.mrb[3].mxu0  ;;  %v408_v23 = vmax.f32 %v359_v16, 0.0 }
 0x177   :  { %v365_v22 = vadd.f32 %v364_v21, %v188_v14  ;;  %v409_v25 = vmax.f32 %v361_v18, 0.0  ;;  %v1300_v14 = vld [vmem:[%s2152_s6] ss:$0 sm:$0xff] }
 0x178   :  { %v410_v24 = vmax.f32 %v363_v20, 0.0 }
 0x179   :  { %v411_v26 = vmax.f32 %v365_v22, 0.0 }
 0x17a   :  { %v412_v27 = vpack.c.bf16 %v410_v24, %v408_v23  ;;  %v1622_v24 = vld [vmem:[#allocation13] sm:$0xff]  }
 0x17b   :  { %v413_v28 = vpack.c.bf16 %v411_v26, %v409_v25  ;;  %v1623_v26 = vld [vmem:[#allocation13 + $0x8] sm:$0xff]  }
 0x17d   :  { %653 = vmatprep.mubr.bf16.mxu0 %v413_v28  ;;  %v1625_v28 = vld [vmem:[#allocation13 + $0x18] sm:$0xff]  }
 0x17e   :  { %654 = vmatmul.mubr.bf16.vlgmr.msra.gmra.mrb[4].mxu0 %v412_v27  ;;  %v1624_v27 = vld [vmem:[#allocation13 + $0x10] sm:$0xff]  }
 0x17f   :  { %1476 = vmatprep.mubr.msk.bf16.mxu0 %vm1863_vm0, %v1862_v53  ;;  %1461 = vmatpush3.bf16.msra.mxu0 %v1630_v7 }
 0x180   :  { %1462 = vmatprep.subr.bf16.mxu0 %v1862_v53 }
 0x183   :  { %1463 = vmatpush3.bf16.msra.mxu0 %v1631_v8 }
 0x184   :  { %v401_v36 = vpop.f32.mrb[0].mxu1  ;;  %1464 = vmatprep.subr.bf16.mxu0 %v1862_v53 }
 0x185   :  { %v402_v37 = vadd.f32 %v401_v36, %v192_v35  ;;  %v1438_v38 = vpop.f32.mrb[1].mxu1 }
 0x186   :  { %v404_v39 = vpop.f32.mrb[2].mxu1 }
 0x187   :  { %v414_v40 = vmax.f32 %v402_v37, 0.0  ;;  %v405_v41 = vadd.f32 %v404_v39, %v192_v35  ;;  %v1439_v42 = vpop.f32.mrb[3].mxu1  ;;  %1465 = vmatpush3.bf16.msra.mxu0 %v1632_v9  ;;  %v1317_v35 = vld [vmem:[%s2154_s8] ss:$0 sm:$0xff]  ;;  %s1864_s8 = smov [#allocation15]  }
 0x188   :  { %1466 = vmatprep.subr.bf16.mxu0 %v1862_v53  ;;  %s1225_s3 = sshll.u32 %s1864_s8, 4  ;;  %s1226_s3 = int_to_ptr.vmem [resolvable:$true] %s1225_s3 }
 0x189   :  { %v415_v43 = vmax.f32 %v405_v41, 0.0  ;;  %s1792_s9 = scalar_lea.vmem %s1226_s3, 128  ;;  %p1797_p1 = scmp.lt.s32.totalorder %s1226_s3, %s1226_s3 }
 0x18a   :  { %p1793_p0 = scmp.ne.s32.totalorder %s1226_s3, %s1792_s9  ;;  %p1798_p2 = scmp.lt.s32.totalorder %s1792_s9, %s1792_s9 }
 0x18b   :  { %v2072_v44 = vpack.c.bf16 %v415_v43, %v414_v40  ;;  %1467 = vmatpush3.bf16.msra.mxu0 %v1633_v10 }
 0x18c   :  { %1468 = vmatprep.subr.bf16.mxu0 %v1862_v53  ;;  %p1799_p3 = por %p1798_p2, %p1797_p1 }
 0x18e   :  { %p1800_p4 = pnand %p1799_p3, %p1793_p0 }
 0x18f   :  { %1469 = vmatpush3.bf16.msra.mxu0 %v1634_v11 }
 0x190   :  { %1470 = vmatprep.subr.bf16.mxu0 %v1862_v53 }
 0x193   :  { %1471 = vmatpush3.bf16.msra.mxu0 %v1635_v12 }
 0x194   :  { %1472 = vmatprep.subr.bf16.mxu0 %v1862_v53 }
 0x197   :  { %1473 = vmatpush3.bf16.msra.mxu0 %v1636_v33 }
 0x198   :  { %1474 = vmatprep.subr.bf16.mxu0 %v1862_v53 }
 0x19b   :  { %1475 = vmatpush3.bf16.msra.mxu0 %v1637_v34 }
 0x251   :  { %v655_v48 = vpop.f32.mrb[4].mxu0 }
 0x252   :  { %v656_v49 = vadd.f32 %v655_v48, %v454_v46  ;;  %v657_v50 = vpop.f32.mrb[5].mxu0 }
 0x253   :  { %v658_v51 = vadd.f32 %v657_v50, %v458_v47  ;;  %v659_v52 = vpop.f32.mrb[6].mxu0 }
 0x254   :  { %v660_v54 = vadd.f32 %v659_v52, %v454_v46  ;;  %v661_v55 = vpop.f32.mrb[7].mxu0  ;;  %v664_v57 = vmax.f32 %v656_v49, 0.0 }
 0x255   :  { %v662_v56 = vadd.f32 %v661_v55, %v458_v47  ;;  %v665_v59 = vmax.f32 %v658_v51, 0.0 }
 0x256   :  { %v666_v58 = vmax.f32 %v660_v54, 0.0 }
 0x257   :  { %v667_v60 = vmax.f32 %v662_v56, 0.0 }
 0x258   :  { %v668_v61 = vpack.c.bf16 %v666_v58, %v664_v57 }
 0x259   :  { %v669_v62 = vpack.c.bf16 %v667_v60, %v665_v59 }
 0x25b   :  { %837 = vmatprep.mubr.bf16.mxu1 %v669_v62 }
 0x25c   :  { %838 = vmatmul.mubr.bf16.vlgmr.msra.gmra.mrb[4].mxu1 %v668_v61 }
 0x25d   :  { %1441 = vmatpush3.bf16.msra.mxu1 %v1614_v63  ;;  %1456 = vmatprep.mubr.msk.bf16.mxu1 %vm1863_vm0, %v1862_v53 }
 0x25e   :  { %1442 = vmatprep.subr.bf16.mxu1 %v1862_v53 }
 0x261   :  { %1443 = vmatpush3.bf16.msra.mxu1 %v1615_v0 }
 0x262   :  { %1444 = vmatprep.subr.bf16.mxu1 %v1862_v53 }
 0x265   :  { %1445 = vmatpush3.bf16.msra.mxu1 %v1616_v1 }
 0x266   :  { %1446 = vmatprep.subr.bf16.mxu1 %v1862_v53 }
 0x269   :  { %1447 = vmatpush3.bf16.msra.mxu1 %v1617_v2 }
 0x26a   :  { %1448 = vmatprep.subr.bf16.mxu1 %v1862_v53 }
 0x26d   :  { %1449 = vmatpush3.bf16.msra.mxu1 %v1618_v3 }
 0x26e   :  { %1450 = vmatprep.subr.bf16.mxu1 %v1862_v53 }
 0x271   :  { %1451 = vmatpush3.bf16.msra.mxu1 %v1619_v4 }
 0x272   :  { %1452 = vmatprep.subr.bf16.mxu1 %v1862_v53 }
 0x275   :  { %1453 = vmatpush3.bf16.msra.mxu1 %v1620_v5 }
 0x276   :  { %1454 = vmatprep.subr.bf16.mxu1 %v1862_v53 }
 0x279   :  { %1455 = vmatpush3.bf16.msra.mxu1 %v1621_v6 }
 0x27a   :  { %1480 = vmatprep.subr.bf16.mxu1 %v1862_v53 }
 0x32f   :  { %v1387_v13 = vpop.f32.mrb[4].mxu1 }
 0x330   :  { %v1388_v15 = vpop.f32.mrb[5].mxu1 }
 0x331   :  { %v1389_v16 = vadd.f32 %v1388_v15, %v1387_v13  ;;  %v1390_v17 = vpop.f32.mrb[6].mxu1 }
 0x332   :  { %v1391_v18 = vpop.f32.mrb[7].mxu1 }
 0x333   :  { %v840_v19 = vadd.f32 %v1389_v16, %v1300_v14  ;;  %v1392_v20 = vadd.f32 %v1391_v18, %v1390_v17 }
 0x335   :  { %v843_v21 = vadd.f32 %v1392_v20, %v1300_v14  ;;  %v846_v22 = vmax.f32 %v840_v19, 0.0 }
 0x337   :  { %v847_v23 = vmax.f32 %v843_v21, 0.0 }
 0x339   :  { %v848_v25 = vpack.c.bf16 %v847_v23, %v846_v22 }
 0x33b   :  { %1457 = vmatmul.mubr.bf16.vlgmr.msra.gmra.mrb[8].mxu1 %v848_v25 }
 0x33c   :  { %1481 = vmatpush3.bf16.msra.mxu1 %v1622_v24  ;;  %1496 = vmatprep.mubr.msk.bf16.mxu1 %vm1863_vm0, %v1862_v53 }
 0x33d   :  { %1482 = vmatprep.subr.bf16.mxu1 %v1862_v53 }
 0x340   :  { %1483 = vmatpush3.bf16.msra.mxu1 %v1623_v26 }
 0x341   :  { %1484 = vmatprep.subr.bf16.mxu1 %v1862_v53 }
 0x344   :  { %1485 = vmatpush3.bf16.msra.mxu1 %v1624_v27 }
 0x345   :  { %1486 = vmatprep.subr.bf16.mxu1 %v1862_v53 }
 0x348   :  { %1487 = vmatpush3.bf16.msra.mxu1 %v1625_v28 }
 0x349   :  { %1488 = vmatprep.subr.bf16.mxu1 %v1862_v53 }
 0x34c   :  { %1489 = vmatpush3.bf16.msra.mxu1 %v1626_v29 }
 0x34d   :  { %1490 = vmatprep.subr.bf16.mxu1 %v1862_v53 }
 0x350   :  { %1491 = vmatpush3.bf16.msra.mxu1 %v1627_v30 }
 0x351   :  { %1492 = vmatprep.subr.bf16.mxu1 %v1862_v53 }
 0x354   :  { %1493 = vmatpush3.bf16.msra.mxu1 %v1628_v31 }
 0x355   :  { %1494 = vmatprep.subr.bf16.mxu1 %v1862_v53  ;;  %v1337_v53 = vld [vmem:[%s2158_s12] ss:$0 sm:$0xff] }
 0x358   :  { %1495 = vmatpush3.bf16.msra.mxu1 %v1629_v32 }
 0x35b   :  { %1497 = vmatmul.mubr.bf16.vlgmr.msra.gmra.mrb[12].mxu1 %v2072_v44 }
 0x40e   :  { %v954_v36 = vpop.f32.mrb[8].mxu1 }
 0x40f   :  { %v955_v37 = vadd.f32 %v1317_v35, %v954_v36  ;;  %v1458_v38 = vpop.f32.mrb[9].mxu1 }
 0x410   :  { %v957_v39 = vpop.f32.mrb[10].mxu1 }
 0x411   :  { %v958_v40 = vadd.f32 %v1317_v35, %v957_v39  ;;  %v1459_v41 = vpop.f32.mrb[11].mxu1  ;;  %v961_v42 = vmax.f32 %v955_v37, 0.0 }
 0x413   :  { %v962_v43 = vmax.f32 %v958_v40, 0.0 }
 0x415   :  { %v963_v45 = vpack.c.bf16 %v962_v43, %v961_v42 }
 0x417   :  { %1477 = vmatmul.mubr.bf16.vlgmr.msra.gmra.mrb[8].mxu0 %v963_v45 }
 0x42e   :  { %v1191_v44 = vpop.f32.mrb[12].mxu1 }
 0x42f   :  { %v1498_v46 = vpop.f32.mrb[13].mxu1  ;;  %v1192_v48 = vadd.f32 %v1337_v53, %v1191_v44 }
 0x430   :  { %v1194_v47 = vpop.f32.mrb[14].mxu1 }
 0x431   :  { %v1195_v49 = vadd.f32 %v1337_v53, %v1194_v47  ;;  %v1499_v50 = vpop.f32.mrb[15].mxu1 }
 0x433   :  { %v1360_v51 = vpack.c.bf16 %v1195_v49, %v1192_v48 }
 0x435   :  { %1361 = vst [vmem:[#allocation15] sm:$0xff] %v1360_v51  }
 0x436   :  { %1803 = shalt.err (!%p1800_p4)
}
 0x437   :  { %s1804_s5 = scalar_lea.hbm %s2160_s14, 128 }
 0x438   :  { %p1805_p5 = scmp.ne.s32.totalorder %s2160_s14, %s1804_s5  ;;  %p1808_p6 = scmp.lt.u32.totalorder %s1804_s5, %s2160_s14 }
 0x43a   :  { %p1810_p7 = pnand %p1808_p6, %p1805_p5 }
 0x43c   :  { %1813 = shalt.err (!%p1810_p7)
}
 0x43d   :  { %1231 = dma.vmem_to_hbm [thread:$0]  %s1226_s3, 128, %s2160_s14, [#allocation16], %s1852_s1, %s1852_s1, %s1853_s30  }
 0x43e   :  { %v1326_v52 = vld [vmem:[%s2156_s10] ss:$0 sm:$0xff]  ;;  %s1865_s7 = smov [#allocation14]  }
 0x43f   :  { %s1213_s21 = sshll.u32 %s1865_s7, 4  ;;  %s1214_s21 = int_to_ptr.vmem [resolvable:$true] %s1213_s21 }
 0x440   :  { %s1814_s11 = scalar_lea.vmem %s1214_s21, 128  ;;  %p1819_p9 = scmp.lt.s32.totalorder %s1214_s21, %s1214_s21 }
 0x441   :  { %p1815_p8 = scmp.ne.s32.totalorder %s1214_s21, %s1814_s11  ;;  %p1820_p10 = scmp.lt.s32.totalorder %s1814_s11, %s1814_s11 }
 0x443   :  { %p1821_p11 = por %p1820_p10, %p1819_p9 }
 0x445   :  { %p1822_p12 = pnand %p1821_p11, %p1815_p8 }
 0x4ea   :  { %v1069_v54 = vpop.f32.mrb[8].mxu0 }
 0x4eb   :  { %v1478_v55 = vpop.f32.mrb[9].mxu0  ;;  %v1070_v57 = vadd.f32 %v1326_v52, %v1069_v54 }
 0x4ec   :  { %v1072_v56 = vpop.f32.mrb[10].mxu0 }
 0x4ed   :  { %v1073_v58 = vadd.f32 %v1326_v52, %v1072_v56  ;;  %v1479_v59 = vpop.f32.mrb[11].mxu0 }
 0x4ef   :  { %v1355_v60 = vpack.c.bf16 %v1073_v58, %v1070_v57 }
 0x4f1   :  { %1356 = vst [vmem:[#allocation14] sm:$0xff] %v1355_v60  }
 0x4f2   :  { %1825 = shalt.err (!%p1822_p12)
}
 0x4f3   :  { %s1826_s20 = scalar_lea.hbm %s2159_s13, 128 }
 0x4f4   :  { %p1827_p13 = scmp.ne.s32.totalorder %s2159_s13, %s1826_s20  ;;  %p1830_p0 = scmp.lt.u32.totalorder %s1826_s20, %s2159_s13 }
 0x4f6   :  { %p1832_p1 = pnand %p1830_p0, %p1827_p13 }
 0x4f8   :  { %1835 = shalt.err (!%p1832_p1)
}
 0x4f9   :  { %1219 = dma.vmem_to_hbm [thread:$0]  %s1214_s21, 128, %s2159_s13, [#allocation4], %s1852_s1, %s1852_s1, %s1853_s30  }
 0x4fa   :  { %1844 = dma.done.wait [#allocation4], 128  }
 0x4fb   :  { %1845 = vsyncadd [#allocation4], 4294967168 }
 0x4fc   :  { %1846 = dma.done.wait [#allocation16], 128  }
 0x4fd   :  { %1847 = vsyncadd [#allocation16], 4294967168 }
 0x4fe   :  { %1238 = vsyncpa [#allocation3], 1 }
 0x4ff   :  { %1239 = vsyncpa [#allocation6], 1 }
 0x500   :  { %1240 = vsyncpa [#allocation9], 1 }
 0x501   :  { %1241 = vsyncpa [#allocation12], 1 }
 0x502   :  { %1242 = vsyncpa [#allocation4], 1 }
 0x503   :  { %1243 = vsyncpa [#allocation16], 1 }

</bundles_post_ra>
